<compile_context>
chip_gen: v5e
topology: v5e:2x2
jax: 0.10.0
libtpu: 0.0.40
codegen_flags: <defaults>
</compile_context>

<pallas_src>
import jax
import jax.numpy as jnp
from jax.experimental import pallas as pl
from jax.experimental.pallas import tpu as pltpu


# ----------------------------------------------------------------------------
# Kernel factory: one (batch, length-block) tile of  out = conv1x1(upsample(x)) + y
# ----------------------------------------------------------------------------
def _make_kernel(rate, tl):
    """rate: upsample factor; tl: x-length per tile (output tile = rate*tl)."""
    g_in = 128                 # input lanes per group
    g_out = 128 * rate         # output lanes produced per group
    n_groups = -(-tl // g_in)  # ceil(tl / 128); last group may be partial

    def kernel(x_ref, y_ref, w_ref, v_ref, out_ref):
        # x_ref : (Cin,  TL)        input channels on sublanes, length on lanes
        # y_ref : (Cout, TLo)       TLo = rate * TL  (skip connection)
        # w_ref : (Cout, Cin)       1x1 conv weight (no bias)
        # v_ref : (128, 128*rate)   0/1 per-group stretch operator V[i,t] = (t//rate == i)
        # out_ref:(Cout, TLo)
        w = w_ref[...].astype(jnp.float32)
        x = x_ref[...].astype(jnp.float32)
        v = v_ref[...]                                   # f32 0/1, tiny & constant
        y = y_ref[...].astype(jnp.float32)

        # 1x1 conv on the un-upsampled signal (conv commutes with nearest upsample).
        z = jnp.dot(w, x, preferred_element_type=jnp.float32)       # (Cout, TL)

        # Nearest upsample, one 128-lane input group at a time (static unroll).
        for q in range(n_groups):
            gin = min(g_in, tl - q * g_in)               # static remainder handling
            gout = gin * rate
            zq = z[:, q * g_in: q * g_in + gin]          # (Cout, gin), lane-aligned slice
            vq = v[:gin, :gout]                          # exact 0/1 column selector
            up = jnp.dot(zq, vq, preferred_element_type=jnp.float32)  # (Cout, gout)
            yq = y[:, q * g_out: q * g_out + gout]
            out_ref[:, pl.ds(q * g_out, gout)] = (up + yq).astype(out_ref.dtype)

    return kernel


def _pick_out_tile(l_out, rate):
    """Largest group-aligned output tile dividing l_out (tile = m * 128*rate)."""
    g = 128 * rate
    if l_out % g != 0:
        # Unaligned length: one full-length block (always a legal BlockSpec; the
        # kernel handles the partial last lane-group, and there is no big
        # operator any more, so this no longer risks a VMEM cliff).
        return l_out
    for m in (64, 32, 16, 8, 4, 2, 1):                   # up to ~1-1.5 MiB HBM/step
        cand = g * m
        if cand <= l_out and l_out % cand == 0:
            return cand
    return l_out


# ----------------------------------------------------------------------------
# Wrapper
# ----------------------------------------------------------------------------
def skip_upsample_pallas(x, y, w, upsample_rate=2):
    """x: (N, Cin, L), y: (N, Cout, rate*L), w: (Cout, Cin, 1) torch Conv1d weight."""
    N, Cin, L = x.shape
    Ny, Cout, Lo = y.shape
    assert Ny == N and Lo == upsample_rate * L
    assert w.shape == (Cout, Cin, 1)

    out_dtype = jnp.result_type(x.dtype, y.dtype, w.dtype)
    W = w[:, :, 0]                                        # (Cout, Cin), tiny

    TLo = _pick_out_tile(Lo, upsample_rate)
    TL = TLo // upsample_rate
    n_blocks = Lo // TLo
    g_out = 128 * upsample_rate

    # Tiny per-group nearest-upsample stretch operator (constant across the grid).
    V = (jnp.arange(g_out)[None, :] // upsample_rate
         == jnp.arange(128)[:, None]).astype(jnp.float32)  # (128, 128*rate)

    kernel = _make_kernel(upsample_rate, TL)

    itemsize_out = jnp.dtype(out_dtype).itemsize
    flops = 2 * N * Cout * Cin * L + 2 * N * Cout * L * g_out
    bytes_accessed = (x.size * x.dtype.itemsize
                      + y.size * y.dtype.itemsize
                      + N * Cout * Lo * itemsize_out)

    out = pl.pallas_call(
        kernel,
        out_shape=jax.ShapeDtypeStruct((N, Cout, Lo), out_dtype),
        grid_spec=pltpu.PrefetchScalarGridSpec(
            num_scalar_prefetch=0,
            grid=(N, n_blocks),
            in_specs=[
                pl.BlockSpec((None, Cin, TL), lambda b, j: (b, 0, j)),    # x
                pl.BlockSpec((None, Cout, TLo), lambda b, j: (b, 0, j)),  # y
                pl.BlockSpec((Cout, Cin), lambda b, j: (0, 0)),           # W (1x1 conv)
                pl.BlockSpec((128, g_out), lambda b, j: (0, 0)),          # V (stretch op)
            ],
            out_specs=pl.BlockSpec((None, Cout, TLo), lambda b, j: (b, 0, j)),
        ),
        compiler_params=pltpu.CompilerParams(
            dimension_semantics=("parallel", "parallel"),
            # Double-buffered working set is ~3 MiB at the largest tile, so this
            # budget fits v5e/v6e (128 MiB) and v7x (64 MiB physical) with room.
            vmem_limit_bytes=32 * 1024 * 1024,
        ),
        cost_estimate=pl.CostEstimate(flops=flops, transcendentals=0,
                                      bytes_accessed=bytes_accessed),
    )(x, y, W, V)
    return out


# ----------------------------------------------------------------------------
# Pure-JAX reference (matches PyTorch semantics) for verification.
# ----------------------------------------------------------------------------
def skip_upsample_reference(x, y, w, upsample_rate=2):
    xu = jnp.repeat(x, upsample_rate, axis=2)             # nn.Upsample(nearest)
    z = jnp.einsum('oi,nil->nol', w[:, :, 0], xu)         # Conv1d k=1, no bias
    return z + y


if __name__ == "__main__":
    key = jax.random.PRNGKey(0)
    N = 2
    in_channels, s_factor, rate = 8, 8, 2                  # Cin = in+s = 16, Cout = 8
    Cin, Cout = in_channels + s_factor, in_channels
    L = 128
    Lo = rate * L
    ks = jax.random.split(key, 3)

    x = jax.random.normal(ks[0], (N, Cin, L), jnp.float32)    # NCL, pre-upsample
    y = jax.random.normal(ks[1], (N, Cout, Lo), jnp.float32)  # skip connection
    w = jax.random.normal(ks[2], (Cout, Cin, 1), jnp.float32) * 0.2  # Conv1d weight

    out = skip_upsample_pallas(x, y, w, upsample_rate=rate)
    out = jax.block_until_ready(out)

    ref = skip_upsample_reference(x, y, w, upsample_rate=rate)
    assert out.shape == ref.shape == (N, Cout, Lo)
    max_err = float(jnp.max(jnp.abs(out - ref)))
    assert max_err < 1e-4, f"mismatch vs reference, max abs err = {max_err}"

    print("KERNEL_OK")
</pallas_src>

<mosaic_0001>
module attributes {stable_mosaic.version = 11 : i64} {
  func.func @kernel(%arg0: i32, %arg1: i32, %arg2: memref<1x16x128xf32, #tpu.memory_space<vmem>>, %arg3: memref<1x8x256xf32, #tpu.memory_space<vmem>>, %arg4: memref<8x16xf32, #tpu.memory_space<vmem>>, %arg5: memref<128x256xf32, #tpu.memory_space<vmem>>, %arg6: memref<1x8x256xf32, #tpu.memory_space<vmem>>) attributes {dimension_semantics = [#tpu.dimension_semantics<parallel>, #tpu.dimension_semantics<parallel>], iteration_bounds = array<i64: 2, 1>, scalar_prefetch = 0 : i64, scratch_operands = 0 : i64, tpu.core_type = #tpu.core_type<tc>, window_params = [{transform_indices = @transform_0, window_bounds = array<i64: 1, 16, 128>}, {transform_indices = @transform_1, window_bounds = array<i64: 1, 8, 256>}, {pipeline_mode = #tpu.pipeline_mode<synchronous>, transform_indices = @transform_2, window_bounds = array<i64: 8, 16>}, {pipeline_mode = #tpu.pipeline_mode<synchronous>, transform_indices = @transform_3, window_bounds = array<i64: 128, 256>}, {transform_indices = @transform_4, window_bounds = array<i64: 1, 8, 256>}]} {
    %c0 = arith.constant 0 : index
    %c0_0 = arith.constant 0 : index
    %0 = vector.load %arg4[%c0, %c0_0] : memref<8x16xf32, #tpu.memory_space<vmem>>, vector<8x16xf32>
    %c0_1 = arith.constant 0 : index
    %c0_2 = arith.constant 0 : index
    %c0_3 = arith.constant 0 : index
    %1 = vector.load %arg2[%c0_1, %c0_2, %c0_3] : memref<1x16x128xf32, #tpu.memory_space<vmem>>, vector<1x16x128xf32>
    %2 = vector.shape_cast %1 : vector<1x16x128xf32> to vector<16x128xf32>
    %c0_4 = arith.constant 0 : index
    %c0_5 = arith.constant 0 : index
    %3 = vector.load %arg5[%c0_4, %c0_5] : memref<128x256xf32, #tpu.memory_space<vmem>>, vector<128x256xf32>
    %c0_6 = arith.constant 0 : index
    %c0_7 = arith.constant 0 : index
    %c0_8 = arith.constant 0 : index
    %4 = vector.load %arg3[%c0_6, %c0_7, %c0_8] : memref<1x8x256xf32, #tpu.memory_space<vmem>>, vector<1x8x256xf32>
    %5 = vector.shape_cast %4 : vector<1x8x256xf32> to vector<8x256xf32>
    %cst = arith.constant dense<0.000000e+00> : vector<8x128xf32>
    %6 = tpu.matmul %0, %2, %cst {dimension_numbers = #tpu.dot_dimension_numbers<[1], [0], [0], [1], [0, 0, 1, 1], [], []>} : vector<8x16xf32>, vector<16x128xf32>, vector<8x128xf32> -> vector<8x128xf32>
    %cst_9 = arith.constant dense<0.000000e+00> : vector<8x256xf32>
    %7 = tpu.matmul %6, %3, %cst_9 {dimension_numbers = #tpu.dot_dimension_numbers<[1], [0], [0], [1], [0, 0, 1, 1], [], []>} : vector<8x128xf32>, vector<128x256xf32>, vector<8x256xf32> -> vector<8x256xf32>
    %8 = arith.addf %7, %5 : vector<8x256xf32>
    %c0_10 = arith.constant 0 : index
    %c0_11 = arith.constant 0 : index
    %c0_12 = arith.constant 0 : index
    %9 = vector.load %arg6[%c0_10, %c0_11, %c0_12] : memref<1x8x256xf32, #tpu.memory_space<vmem>>, vector<1x8x256xf32>
    %10 = vector.shape_cast %9 : vector<1x8x256xf32> to vector<8x256xf32>
    %11 = vector.shape_cast %8 : vector<8x256xf32> to vector<1x8x256xf32>
    tpu.vector_store %arg6[%c0_10, %c0_11, %c0_12], %11 {strides = array<i32>} : memref<1x8x256xf32, #tpu.memory_space<vmem>>, vector<1x8x256xf32>,
    return
  }
  func.func @transform_0(%arg0: i32, %arg1: i32) -> (i32, i32, i32) {
    %c0_i32 = arith.constant 0 : i32
    %c0_i32_0 = arith.constant 0 : i32
    return %arg0, %c0_i32, %arg1 : i32, i32, i32
  }
  func.func @transform_1(%arg0: i32, %arg1: i32) -> (i32, i32, i32) {
    %c0_i32 = arith.constant 0 : i32
    %c0_i32_0 = arith.constant 0 : i32
    return %arg0, %c0_i32, %arg1 : i32, i32, i32
  }
  func.func @transform_2(%arg0: i32, %arg1: i32) -> (i32, i32) {
    %c0_i32 = arith.constant 0 : i32
    %c0_i32_0 = arith.constant 0 : i32
    %c0_i32_1 = arith.constant 0 : i32
    return %c0_i32, %c0_i32_0 : i32, i32
  }
  func.func @transform_3(%arg0: i32, %arg1: i32) -> (i32, i32) {
    %c0_i32 = arith.constant 0 : i32
    %c0_i32_0 = arith.constant 0 : i32
    %c0_i32_1 = arith.constant 0 : i32
    return %c0_i32, %c0_i32_0 : i32, i32
  }
  func.func @transform_4(%arg0: i32, %arg1: i32) -> (i32, i32, i32) {
    %c0_i32 = arith.constant 0 : i32
    %c0_i32_0 = arith.constant 0 : i32
    return %arg0, %c0_i32, %arg1 : i32, i32, i32
  }
}

</mosaic_0001>

<bundles_post_ra>
// kernel: tpu_custom_call.1
= control target key start
LH: loop header
LB: loop body
LE: loop exit
PB: predicated region body
PF: predicated region fallthrough
CT: control target
= control target key end

     0   :  { %s1106_s0 = inlined_call_operand.hbm [shape: f32[2,16,128], index: 0, kind: input, shape index: {}]   ;;  %s1107_s1 = inlined_call_operand.hbm [shape: f32[2,8,256], index: 1, kind: input, shape index: {}]   ;;  %s1108_s2 = inlined_call_operand.hbm [shape: f32[8,16], index: 2, kind: input, shape index: {}]   ;;  %s1109_s3 = inlined_call_operand.hbm [shape: f32[128,256], index: 3, kind: input, shape index: {}]   ;;  %s1110_s4 = inlined_call_operand.hbm [shape: f32[2,8,256], index: 4, kind: output, shape index: {}]  }
   0x1   :  { %1114 = sst [smem:[#allocation19_spill]] %s1106_s0 }
   0x2   :  { %1115 = sst [smem:[#allocation20_spill]] %s1108_s2 }
   0x3   :  { %1116 = sst [smem:[#allocation21_spill]] %s1109_s3 }
   0x4   :  { %9 = vsyncpa [#allocation3], 0 }
   0x5   :  { %11 = vsyncpa [#allocation3 + $0x1], 0 }
   0x6   :  { %12 = vsyncpa [#allocation6], 0 }
   0x7   :  { %14 = vsyncpa [#allocation6 + $0x1], 0 }
   0x8   :  { %15 = vsyncpa [#allocation9], 0 }
   0x9   :  { %16 = vsyncpa [#allocation4], 0 }
   0xa   :  { %18 = vsyncpa [#allocation4 + $0x1], 0  ;;  %s928_s15 = smov 0   ;;  %s930_s16 = smov 0  }
   0xb   :  { %s932_s17 = smov 0   ;;  %s934_s18 = smov 0  }
   0xc   :  { %s936_s19 = smov 0   ;;  %s938_s20 = smov 0  }
   0xd LB: > { %1117 = sst [smem:[#allocation16_spill]] %s875_s15  ;;  %s959_s21 = sadd.s32 4294967295, %s895_s20   ;;  %s895_s20 = sphi %s938_s20, %s24_s20   ;;  %s891_s19 = sphi %s936_s19, %s1137_s19   ;;  %s887_s18 = sphi %s934_s18, %s1136_s18   ;;  %s883_s17 = sphi %s932_s17, %s1135_s17   ;;  %s879_s16 = sphi %s930_s16, %s1134_s16   ;;  %s875_s15 = sphi %s928_s15, %s1133_s15  }
   0xe   : > { %s563_s22 = sadd.s32 4294967294, %s895_s20   ;;  %p52_p0 = scmp.ne.s32.totalorder %s883_s17, %s879_s16 }
   0xf   : > { %p53_p1 = scmp.eq.s32.totalorder %s895_s20, 0  ;;  %p58_p2 = scmp.ne.s32.totalorder %s879_s16, %s875_s15 }
  0x10   : > { %p59_p3 = scmp.eq.s32.totalorder %s959_s21, 0  ;;  %p154_p4 = scmp.eq.s32.totalorder %s959_s21, 1 }
  0x11   : > { %p970_p5 = por %p53_p1, %p52_p0  ;;  %p160_p6 = scmp.eq.s32.totalorder %s563_s22, 1 }
  0x12   : > { %p976_p7 = por %p59_p3, %p58_p2  ;;  %p980_p8 = por %p154_p4, %p52_p0 }
  0x13   : > { %p984_p9 = por %p160_p6, %p58_p2  ;;  %p564_p10 = scmp.ge.s32.totalorder %s895_s20, 1 }
  0x14   : > { %p167_p11 = scmp.lt.s32.totalorder %s895_s20, 3  ;;  %s1123_s2 = sld [smem:[#allocation20_spill]] }
  0x15   : > { %s1121_s27 = scalar_select %p984_p9, 1, 0 }
  0x16   : > { %p993_p12 = pnand %p564_p10, %p167_p11  ;;  %s897_s6 = smov [#allocation7]  }
  0x17   : > { %1122 = sst [smem:[#allocation17_spill]] %s1121_s27  ;;  %s181_s7 = sshll.u32 %s897_s6, 4  ;;  %s182_s7 = int_to_ptr.vmem [resolvable:$true] %s181_s7 }
  0x18   : > { %p567_p13 = scmp.ge.s32.totalorder %s895_s20, 2  ;;  %p603_p0 = pneg %p993_p12 }
  0x19   : > { %p623_p1 = scmp.lt.s32.totalorder %s895_s20, 2  ;;  %s1125_s3 = sld [smem:[#allocation21_spill]] }
  0x1a   : > { %s179_s30 = sshll.u32 %s1123_s2, 4  ;;  %p604_p2 = pnand %p603_p0, %p59_p3  ;;  %s180_s30 = int_to_ptr.hbm [resolvable:$true] %s179_s30 }
  0x1b   : > { %p1008_p4 = pnand %p623_p1, %p970_p5  ;;  %s898_s12 = smov [#allocation8]  }
  0x1c   : > { %s192_s13 = sshll.u32 %s898_s12, 4  ;;  %s899_s14 = smov 256   ;;  %s193_s13 = int_to_ptr.vmem [resolvable:$true] %s192_s13 }
  0x1d   : > { %606 = dma.hbm_to_vmem [thread:$0]  (!%p604_p2), %s180_s30, 128, %s182_s7, [#allocation6]  }
  0x1e   : > { %s900_s22 = smov 16   ;;  %s206_s28 = sand.u32 1, %s883_s17  }
  0x1f   : > { %s190_s10 = sshll.u32 %s1125_s3, 4  ;;  %s36_s29 = sadd.s32 1, %s891_s19  ;;  %s191_s10 = int_to_ptr.hbm [resolvable:$true] %s190_s10 }
  0x20   : > { %609 = dma.hbm_to_vmem [thread:$0]  (!%p604_p2), %s191_s10, 4096, %s193_s13, [#allocation9], %s899_s14, %s899_s14, %s900_s22  }
  0x21   : > { %s568_s6 = sshll.u32 %s206_s28, 4  ;;  %p38_p6 = scmp.ge.s32.totalorder %s36_s29, 2 }
  0x22   : > { %s586_s24 = sshll.u32 %s891_s19, 4  ;;  %s210_s8 = scalar_lea.vmem [#allocation2], %s568_s6 }
  0x23   : > { %s219_s9 = sshll.u32 %s210_s8, 4  ;;  %s1139_s29 = smov (%p38_p6, %s36_s29), 0  ;;  %s220_s9 = int_to_ptr.vmem [resolvable:$true] %s219_s9 }
  0x24   : > { %1127 = sst [smem:[#allocation18_spill]] %s1139_s29  ;;  %s40_s7 = ssub.s32 %s891_s19, %s1139_s29 }
  0x25   : > { %s1128_s0 = sld [smem:[#allocation19_spill]]  ;;  %p43_p5 = scmp.eq.s32.totalorder %s40_s7, 0 }
  0x26   : > { %s1129_s10 = sadd.s32 1, %s883_s17  ;;  %s207_s14 = scalar_lea.sflag [#allocation3], %s206_s28 }
  0x27   : > { %s1025_s13 = scalar_select %p43_p5, %s883_s17, %s1129_s10  }
  0x28   : > { %s901_s22 = smov 128   ;;  %s902_s3 = smov 8  }
  0x29   : > { %s229_s8 = sand.u32 1, %s895_s20   ;;  %s240_s23 = scalar_lea.hbm %s1107_s1, %s586_s24 }
  0x2a   : > { %s242_s12 = sshll.u32 %s240_s23, 4  ;;  %s1038_s28 = sand.u32 (!%p993_p12), 1, %s879_s16   ;;  %s243_s12 = int_to_ptr.hbm [resolvable:$true] %s242_s12 }
  0x2b   : > { %s216_s30 = scalar_lea.hbm %s1128_s0, %s586_s24  ;;  %s233_s0 = scalar_lea.vmem [#allocation5], %s568_s6 }
  0x2c   : > { %s217_s2 = sshll.u32 %s216_s30, 4  ;;  %s244_s29 = sshll.u32 %s233_s0, 4  ;;  %s218_s2 = int_to_ptr.hbm [resolvable:$true] %s217_s2  ;;  %s245_s29 = int_to_ptr.vmem [resolvable:$true] %s244_s29 }
  0x2d   : > { %613 = dma.hbm_to_vmem [thread:$0]  (!%p1008_p4), %s218_s2, 256, %s220_s9, %s207_s14, %s901_s22, %s901_s22, %s902_s3  }
  0x2e   : > { %s230_s30 = scalar_lea.sflag [#allocation6], %s229_s8  ;;  %253 = sbr.rel (%p993_p12) target bundleno = 326 (0x146), region = 36 }
  0x2f   : > { %616 = dma.hbm_to_vmem [thread:$0]  (!%p1008_p4), %s243_s12, 256, %s245_s29, %s230_s30  }
  0x30   : > { %s1041_s2 = sshll.u32 (!%p993_p12), %s1038_s28, 4  ;;  %s256_s3 = scalar_lea.sflag (!%p993_p12), [#allocation3], %s1038_s28 }
  0x31   : > { %s259_s15 = scalar_lea.vmem (!%p993_p12), [#allocation2], %s1041_s2 }
  0x33   : > { %854 = dma.done.wait (%p976_p7), %s256_s3, 256  }
  0x34   : > { %856 = vsyncadd (%p976_p7), %s256_s3, 4294967040  ;;  %s265_s0 = sand.u32 1, %s959_s21   ;;  %s269_s5 = scalar_lea.vmem [#allocation5], %s1041_s2 }
  0x35   : > { %s266_s27 = scalar_lea.sflag [#allocation6], %s265_s0 }
  0x36   : > { %858 = dma.done.wait (%p976_p7), %s266_s27, 256  }
  0x37   : > { %860 = vsyncadd (%p976_p7), %s266_s27, 4294967040 }
  0x38   : > { %862 = dma.done.wait (%p59_p3), [#allocation6], 128  }
  0x39   : > { %864 = vsyncadd (%p59_p3), [#allocation6], 4294967168 }
  0x3a   : > { %866 = dma.done.wait (%p59_p3), [#allocation9], 4096  }
  0x3b   : > { %868 = vsyncadd (%p59_p3), [#allocation9], 4294963200  ;;  %v314_v0 = vld [vmem:[%s259_s15 + $0x8] sm:$0xff]  ;;  %v313_v1 = vld [vmem:[%s259_s15] sm:$0xff]  ;;  %vm349_vm0 = vcmask 130048   ;;  %s588_s21 = sshll.u32 %s887_s18, 4 }
  0x3c   : > { %v312_v2 = vld [vmem:[#allocation7] sm:$0xff]  ;;  %367 = vmatpush.msra.mxu0 %v314_v0  ;;  %v345_v3 = vld [vmem:[#allocation8 + $0xf0] sm:$0xff]  ;;  %v343_v5 = vld [vmem:[#allocation8 + $0xe0] sm:$0xff]  ;;  %s429_s29 = scalar_lea.hbm %s1110_s4, %s588_s21  ;;  %s309_s6 = scalar_lea.vmem [#allocation10], %s1041_s2 }
  0x3d   : > { %v346_v4 = vld [vmem:[#allocation8 + $0xf8] sm:$0xff]  ;;  %373 = vmatpush.msra.mxu1 %v345_v3  ;;  %v344_v6 = vld [vmem:[#allocation8 + $0xe8] sm:$0xff]  ;;  %v341_v7 = vld [vmem:[#allocation8 + $0xd0] sm:$0xff]  ;;  %s431_s24 = sshll.u32 %s309_s6, 4  ;;  %s433_s9 = sshll.u32 %s429_s29, 4  ;;  %s432_s24 = int_to_ptr.vmem [resolvable:$true] %s431_s24  ;;  %s434_s9 = int_to_ptr.hbm [resolvable:$true] %s433_s9 }
  0x3e   : > { %393 = vmatpush.msra.mxu2 %v346_v4  ;;  %368 = vmatpush.msra.mxu0 %v313_v1  ;;  %v342_v8 = vld [vmem:[#allocation8 + $0xd8] sm:$0xff]  ;;  %v339_v9 = vld [vmem:[#allocation8 + $0xc0] sm:$0xff]  ;;  %v340_v10 = vld [vmem:[#allocation8 + $0xc8] sm:$0xff]  ;;  %s416_s7 = scalar_lea.sflag [#allocation4], %s1038_s28  ;;  %s815_s18 = sshra.s32 %s434_s9, 4  ;;  %s816_s18 = int_to_ptr.hbm [resolvable:$true] %s815_s18 }
  0x3f   : > { %580 = vmatmul.msk.f32.vlgmr.msra.gmra.mxu0 %vm349_vm0, %v312_v2  ;;  %374 = vmatpush.msra.mxu1 %v343_v5  ;;  %v337_v11 = vld [vmem:[#allocation8 + $0xb0] sm:$0xff]  ;;  %v338_v12 = vld [vmem:[#allocation8 + $0xb8] sm:$0xff]  ;;  %v335_v13 = vld [vmem:[#allocation8 + $0xa0] sm:$0xff]  ;;  %s817_s10 = scalar_lea.hbm %s816_s18, 16  ;;  %s821_s8 = scalar_lea.hbm %s1110_s4, 32 }
  0x40   : > { %394 = vmatpush.msra.mxu2 %v344_v6  ;;  %v336_v14 = vld [vmem:[#allocation8 + $0xa8] sm:$0xff]  ;;  %v333_v15 = vld [vmem:[#allocation8 + $0x90] sm:$0xff]  ;;  %v334_v16 = vld [vmem:[#allocation8 + $0x98] sm:$0xff]  ;;  %p818_p3 = scmp.ne.s32.totalorder %s816_s18, %s817_s10  ;;  %p822_p11 = scmp.lt.s32.totalorder %s816_s18, %s1110_s4 }
  0x41   : > { %375 = vmatpush.msra.mxu1 %v341_v7  ;;  %v331_v17 = vld [vmem:[#allocation8 + $0x80] sm:$0xff]  ;;  %v332_v18 = vld [vmem:[#allocation8 + $0x88] sm:$0xff]  ;;  %v329_v19 = vld [vmem:[#allocation8 + $0x70] sm:$0xff]  ;;  %p823_p12 = scmp.lt.s32.totalorder %s821_s8, %s817_s10 }
  0x42   : > { %395 = vmatpush.msra.mxu2 %v342_v8  ;;  %v330_v20 = vld [vmem:[#allocation8 + $0x78] sm:$0xff]  ;;  %v327_v21 = vld [vmem:[#allocation8 + $0x60] sm:$0xff]  ;;  %v328_v22 = vld [vmem:[#allocation8 + $0x68] sm:$0xff]  ;;  %p819_p7 = pnand %p818_p3, %p980_p8 }
  0x43   : > { %376 = vmatpush.msra.mxu1 %v339_v9  ;;  %v325_v23 = vld [vmem:[#allocation8 + $0x50] sm:$0xff]  ;;  %v326_v24 = vld [vmem:[#allocation8 + $0x58] sm:$0xff]  ;;  %v323_v25 = vld [vmem:[#allocation8 + $0x40] sm:$0xff]  ;;  %p824_p0 = por %p823_p12, %p822_p11 }
  0x44   : > { %396 = vmatpush.msra.mxu2 %v340_v10  ;;  %v324_v26 = vld [vmem:[#allocation8 + $0x48] sm:$0xff]  ;;  %v321_v27 = vld [vmem:[#allocation8 + $0x30] sm:$0xff]  ;;  %v322_v28 = vld [vmem:[#allocation8 + $0x38] sm:$0xff]  ;;  %p820_p10 = pneg %p819_p7 }
  0x45   : > { %377 = vmatpush.msra.mxu1 %v337_v11  ;;  %v319_v29 = vld [vmem:[#allocation8 + $0x20] sm:$0xff]  ;;  %v320_v30 = vld [vmem:[#allocation8 + $0x28] sm:$0xff]  ;;  %v317_v31 = vld [vmem:[#allocation8 + $0x10] sm:$0xff] }
  0x46   : > { %397 = vmatpush.msra.mxu2 %v338_v12  ;;  %v318_v32 = vld [vmem:[#allocation8 + $0x18] sm:$0xff]  ;;  %v315_v33 = vld [vmem:[#allocation8] sm:$0xff]  ;;  %v316_v34 = vld [vmem:[#allocation8 + $0x8] sm:$0xff]  ;;  %p825_p1 = pnand %p824_p0, %p820_p10 }
  0x47   : > { %378 = vmatpush.msra.mxu1 %v335_v13  ;;  %v347_v36 = vld [vmem:[%s269_s5] sm:$0xff]  ;;  %v348_v39 = vld [vmem:[%s269_s5 + $0x8] sm:$0xff] }
  0x48   : > { %398 = vmatpush.msra.mxu2 %v336_v14 }
  0x49   : > { %379 = vmatpush.msra.mxu1 %v333_v15 }
  0x4a   : > { %399 = vmatpush.msra.mxu2 %v334_v16 }
  0x4b   : > { %380 = vmatpush.msra.mxu1 %v331_v17 }
  0x4c   : > { %400 = vmatpush.msra.mxu2 %v332_v18 }
  0x4d   : > { %381 = vmatpush.msra.mxu1 %v329_v19 }
  0x4e   : > { %401 = vmatpush.msra.mxu2 %v330_v20 }
  0x4f   : > { %382 = vmatpush.msra.mxu1 %v327_v21 }
  0x50   : > { %402 = vmatpush.msra.mxu2 %v328_v22 }
  0x51   : > { %383 = vmatpush.msra.mxu1 %v325_v23 }
  0x52   : > { %403 = vmatpush.msra.mxu2 %v326_v24 }
  0x53   : > { %384 = vmatpush.msra.mxu1 %v323_v25 }
  0x54   : > { %404 = vmatpush.msra.mxu2 %v324_v26 }
  0x55   : > { %385 = vmatpush.msra.mxu1 %v321_v27 }
  0x56   : > { %405 = vmatpush.msra.mxu2 %v322_v28 }
  0x57   : > { %386 = vmatpush.msra.mxu1 %v319_v29 }
  0x58   : > { %406 = vmatpush.msra.mxu2 %v320_v30 }
  0x59   : > { %387 = vmatpush.msra.mxu1 %v317_v31 }
  0x5a   : > { %407 = vmatpush.msra.mxu2 %v318_v32 }
  0x5b   : > { %388 = vmatpush.msra.mxu1 %v315_v33 }
  0x5c   : > { %408 = vmatpush.msra.mxu2 %v316_v34 }
  0xbc   : > { %v370_v35 = vpop.f32.mrf.mxu0 }
  0xbd   : > { %389 = vmatmul.f32.vlgmr.msra.gmra.mxu1 %v370_v35  ;;  %409 = vmatmul.f32.vlgmr.msra.gmra.mxu2 %v370_v35 }
 0x13a   : > { %v390_v37 = vpop.f32.mrf.mxu1 }
 0x13b   : > { %v391_v38 = vadd.f32 %v390_v37, %v347_v36 }
 0x13d   : > { %413 = vst [vmem:[%s309_s6] sm:$0xff] %v391_v38 }
 0x140   : > { %v410_v40 = vpop.f32.mrf.mxu2 }
 0x141   : > { %v411_v41 = vadd.f32 %v410_v40, %v348_v39 }
 0x143   : > { %414 = vst [vmem:[%s309_s6 + $0x8] sm:$0xff] %v411_v41 }
 0x144   : > { %828 = shalt.err (!%p825_p1)
}
 0x145   : > { %601 = dma.vmem_to_hbm [thread:$0]  (%p980_p8), %s432_s24, 256, %s434_s9, %s416_s7  }
 0x146 PF: > { %s1130_s30 = sld [smem:[#allocation16_spill]]  ;;  %p618_p2 = pnand %p567_p13, %p984_p9 }
 0x148   : > { %p619_p4 = pneg %p618_p2 }
 0x14c   : > { %s445_s2 = sand.u32 1, %s1130_s30  }
 0x14d   : > { %s446_s3 = scalar_lea.sflag [#allocation4], %s445_s2 }
 0x14e   : > { %870 = dma.done.wait (%p619_p4), %s446_s3, 256  }
 0x14f   : > { %872 = vsyncadd (%p619_p4), %s446_s3, 4294967040  ;;  %s24_s20 = sadd.s32 1, %s895_s20   ;;  %s1132_s26 = sld [smem:[#allocation18_spill]] }
 0x150   : > { %p21_p6 = scmp.ge.s32.totalorder %s24_s20, 4   ;;  %s1133_s15 = smov %s879_s16 }
 0x151   : > { %s1134_s16 = smov %s883_s17  ;;  %s1135_s17 = smov %s1025_s13 }
 0x152   : > { %s1136_s18 = smov %s891_s19  ;;  %23 = sbr.rel (!%p21_p6) target bundleno = 13 (0xd), region = 102 }
 0x155   : > { %s1137_s19 = smov %s1132_s26 }
 0x157   :  { %452 = vsyncpa [#allocation3], 1 }
 0x158   :  { %454 = vsyncpa [#allocation3 + $0x1], 1 }
 0x159   :  { %455 = vsyncpa [#allocation6], 1 }
 0x15a   :  { %457 = vsyncpa [#allocation6 + $0x1], 1 }
 0x15b   :  { %458 = vsyncpa [#allocation9], 1 }
 0x15c   :  { %459 = vsyncpa [#allocation4], 1 }
 0x15d   :  { %461 = vsyncpa [#allocation4 + $0x1], 1 }

</bundles_post_ra>
